<compile_context>
chip_gen: v5e
topology: v5e:2x2
jax: 0.10.0
libtpu: 0.0.40
codegen_flags: <defaults>
</compile_context>

<pallas_src>
import numpy as np

import jax
import jax.numpy as jnp
from jax.experimental import pallas as pl
from jax.experimental.pallas import tpu as pltpu


# ---------------------------------------------------------------------------
# Fused kernel: conv1+bn1+relu -> conv2+bn2+relu -> folded FC head
# ---------------------------------------------------------------------------
def _cnn_kernel(x_ref, w1_ref, b1_ref, w2_ref, b2_ref, wh_ref, bh_ref, o_ref):
    # Input may already be bf16 (preferred producer dtype); astype is then a no-op.
    a = x_ref[...].astype(jnp.bfloat16)                               # (bt, C*L0)
    h = jnp.dot(a, w1_ref[...], preferred_element_type=jnp.float32) + b1_ref[...]
    h = jnp.maximum(h, 0.0).astype(jnp.bfloat16)                      # (bt, C*L1)
    h = jnp.dot(h, w2_ref[...], preferred_element_type=jnp.float32) + b2_ref[...]
    h = jnp.maximum(h, 0.0).astype(jnp.bfloat16)                      # (bt, C*L2)
    o = jnp.dot(h, wh_ref[...], preferred_element_type=jnp.float32) + bh_ref[...]
    o_ref[...] = o.astype(o_ref.dtype)                                # (bt, nout)


# ---------------------------------------------------------------------------
# Forward wrapper
# ---------------------------------------------------------------------------
def _pick_batch_tile(B):
    # >=2 grid steps when possible (v7x has 2 TensorCores; also enables
    # double-buffered input DMA), tile multiple of 16, capped at 256 rows.
    if B >= 32 and B % 16 == 0:
        for bt in (256, 128, 64, 32, 16):
            if bt * 2 <= B and B % bt == 0:
                return bt
    return B


def cnn_forward(prep, x, out_features, *, batch_tile=None):
    B, C, L = x.shape
    # Channel-major (torch flatten) layout -> this reshape is a free view,
    # no XLA transpose pass / extra HBM traffic for x.
    xflat = x.reshape(B, C * L)

    bt = _pick_batch_tile(B) if batch_tile is None else batch_tile
    assert B % bt == 0 and (bt == B or bt % 16 == 0)
    grid = (B // bt,)

    w1, b1, w2, b2, wh, bh = (prep["w1"], prep["b1"], prep["w2"],
                              prep["b2"], prep["wh"], prep["bh"])
    nout = wh.shape[1]

    def whole(a):  # whole-array block (weights / biases), same block every step
        return pl.BlockSpec(a.shape, lambda i: (0,) * a.ndim)

    out = pl.pallas_call(
        _cnn_kernel,
        out_shape=jax.ShapeDtypeStruct((B, nout), jnp.float32),
        grid=grid,
        in_specs=[pl.BlockSpec((bt, C * L), lambda i: (i, 0))]
                 + [whole(w) for w in (w1, b1, w2, b2, wh, bh)],
        out_specs=pl.BlockSpec((bt, nout), lambda i: (i, 0)),
        compiler_params=pltpu.CompilerParams(
            dimension_semantics=("parallel",),
            vmem_limit_bytes=32 * 1024 * 1024,   # safe on v5e/v6e/v7x
        ),
    )(xflat, w1, b1, w2, b2, wh, bh)

    if out_features == 3:
        return out[:, :2], out[:, 2:]      # tiny split outside the kernel
    return out


# ---------------------------------------------------------------------------
# Parameters: raw (PyTorch-layout) init + one-time prep (fold/layout/cast)
# ---------------------------------------------------------------------------
def init_params(key, channels, kernel_size, window_size, out_features):
    C, K = channels, kernel_size
    L1 = window_size - K + 1            # get_sequence_out(window, k)
    L2 = L1 - K + 1                     # get_sequence_out(out, k)
    in_features = C * L2
    hid = in_features // 2

    keys = jax.random.split(key, 16)

    def kaiming(k, shape, fan_in):
        return jax.random.normal(k, shape, jnp.float32) * jnp.sqrt(2.0 / fan_in)

    def bias(k, shape, fan_in):
        bound = 1.0 / jnp.sqrt(fan_in)
        return jax.random.uniform(k, shape, jnp.float32, -bound, bound)

    conv_fan = C * K
    ones, zeros = jnp.ones((C,), jnp.float32), jnp.zeros((C,), jnp.float32)
    return {
        "conv1_w": kaiming(keys[0], (C, C, K), conv_fan),
        "conv1_b": bias(keys[1], (C,), conv_fan),
        "conv2_w": kaiming(keys[2], (C, C, K), conv_fan),
        "conv2_b": bias(keys[3], (C,), conv_fan),
        "bn1_gamma": ones, "bn1_beta": zeros, "bn1_mean": zeros, "bn1_var": ones,
        "bn2_gamma": ones, "bn2_beta": zeros, "bn2_mean": zeros, "bn2_var": ones,
        "fc1_w": kaiming(keys[4], (hid, in_features), in_features),
        "fc1_b": bias(keys[5], (hid,), in_features),
        "fc2_w": kaiming(keys[6], (out_features, hid), hid),
        "fc2_b": bias(keys[7], (out_features,), hid),
        "rfc1_w": kaiming(keys[8], (hid, in_features), in_features),
        "rfc1_b": bias(keys[9], (hid,), in_features),
        "cfc1_w": kaiming(keys[10], (hid, in_features), in_features),
        "cfc1_b": bias(keys[11], (hid,), in_features),
        "rfc2_w": kaiming(keys[12], (2, hid), hid),
        "rfc2_b": bias(keys[13], (2,), hid),
        "cfc2_w": kaiming(keys[14], (1, hid), hid),
        "cfc2_b": bias(keys[15], (1,), hid),
    }


def prepare_params(raw, channels, kernel_size, window_size, out_features, eps=1e-5):
    """One-time host-side fold + layout prep so the kernel is 3 matmuls."""
    C, K = channels, kernel_size
    L0 = window_size
    L1 = L0 - K + 1
    L2 = L1 - K + 1

    def f32(a):
        return np.asarray(a, np.float32)

    def fold_bn(w, b, gamma, beta, mean, var):
        # BN(conv(x)) in eval mode == (s*W) * x + (s*(b - mean) + beta)
        s = f32(gamma) / np.sqrt(f32(var) + eps)
        return f32(w) * s[:, None, None], s * (f32(b) - f32(mean)) + f32(beta)

    def conv_matrix(wf, l_in):
        # Dense lowered conv; channel-major (torch flatten) layout on BOTH sides:
        #   rows ci*l_in + li  (so x.reshape(B, C*l_in) feeds it directly)
        #   cols co*l_out + lo
        # W[ci*l_in + li, co*l_out + lo] = wf[co, ci, li - lo] for 0 <= li-lo < K.
        l_out = l_in - K + 1
        W = np.zeros((C * l_in, C * l_out), np.float32)
        ar = np.arange(l_out)
        for co in range(C):
            for ci in range(C):
                for k in range(K):
                    W[ci * l_in + ar + k, co * l_out + ar] = wf[co, ci, k]
        return W

    w1f, b1f = fold_bn(raw["conv1_w"], raw["conv1_b"], raw["bn1_gamma"],
                       raw["bn1_beta"], raw["bn1_mean"], raw["bn1_var"])
    w2f, b2f = fold_bn(raw["conv2_w"], raw["conv2_b"], raw["bn2_gamma"],
                       raw["bn2_beta"], raw["bn2_mean"], raw["bn2_var"])

    # Fold the activation-free FC head(s) into ONE (C*L2, nout) matrix (f32,
    # cast to bf16 once).  Valid because the reference applies no nonlinearity
    # between fc1 and fc2 (nor between r/cfc1 and r/cfc2).
    if out_features != 3:
        wa, wb = f32(raw["fc1_w"]), f32(raw["fc2_w"])          # (hid,in), (nout,hid)
        wh = wa.T @ wb.T                                       # (in, nout)
        bh = f32(raw["fc1_b"]) @ wb.T + f32(raw["fc2_b"])
    else:
        wr1, wr2 = f32(raw["rfc1_w"]), f32(raw["rfc2_w"])
        wc1, wc2 = f32(raw["cfc1_w"]), f32(raw["cfc2_w"])
        wh = np.concatenate([wr1.T @ wr2.T, wc1.T @ wc2.T], axis=1)   # (in, 3)
        bh = np.concatenate([f32(raw["rfc1_b"]) @ wr2.T + f32(raw["rfc2_b"]),
                             f32(raw["cfc1_b"]) @ wc2.T + f32(raw["cfc2_b"])])

    return {
        "w1": jnp.asarray(conv_matrix(w1f, L0), jnp.bfloat16),
        "b1": jnp.asarray(np.repeat(b1f, L1)[None, :], jnp.float32),
        "w2": jnp.asarray(conv_matrix(w2f, L1), jnp.bfloat16),
        "b2": jnp.asarray(np.repeat(b2f, L2)[None, :], jnp.float32),
        "wh": jnp.asarray(wh, jnp.bfloat16),
        "bh": jnp.asarray(bh[None, :], jnp.float32),
    }


# ---------------------------------------------------------------------------
# Pure-JAX reference (for correctness check against the PyTorch semantics)
# ---------------------------------------------------------------------------
def reference_forward(raw, x, out_features, eps=1e-5):
    def conv1d(x, w, b):
        K = w.shape[-1]
        L_out = x.shape[-1] - K + 1
        cols = jnp.stack([x[:, :, k:k + L_out] for k in range(K)], axis=-1)
        return jnp.einsum("bclk,ock->bol", cols, w) + b[None, :, None]

    def bn(y, gamma, beta, mean, var):
        s = gamma / jnp.sqrt(var + eps)
        return (y - mean[None, :, None]) * s[None, :, None] + beta[None, :, None]

    h = jnp.maximum(bn(conv1d(x, raw["conv1_w"], raw["conv1_b"]),
                       raw["bn1_gamma"], raw["bn1_beta"],
                       raw["bn1_mean"], raw["bn1_var"]), 0.0)
    h = jnp.maximum(bn(conv1d(h, raw["conv2_w"], raw["conv2_b"]),
                       raw["bn2_gamma"], raw["bn2_beta"],
                       raw["bn2_mean"], raw["bn2_var"]), 0.0)
    flat = h.reshape(x.shape[0], -1)
    if out_features != 3:
        return (flat @ raw["fc1_w"].T + raw["fc1_b"]) @ raw["fc2_w"].T + raw["fc2_b"]
    out_r = (flat @ raw["rfc1_w"].T + raw["rfc1_b"]) @ raw["rfc2_w"].T + raw["rfc2_b"]
    out_c = (flat @ raw["cfc1_w"].T + raw["cfc1_b"]) @ raw["cfc2_w"].T + raw["cfc2_b"]
    return out_r, out_c


# ---------------------------------------------------------------------------
if __name__ == "__main__":
    channels, window_size, kernel_size = 4, 16, 3

    key = jax.random.PRNGKey(0)
    kx, kp = jax.random.split(key)
    raw = init_params(kp, channels, kernel_size, window_size, out_features=4)

    # ---- out_features != 3 path (fc1/fc2 head), toy batch ------------------
    B = 2
    x = jax.random.normal(kx, (B, channels, window_size), jnp.float32)
    prep4 = prepare_params(raw, channels, kernel_size, window_size, out_features=4)
    out = cnn_forward(prep4, x, 4)
    jax.block_until_ready(out)
    assert out.shape == (B, 4)
    ref = reference_forward(raw, x, 4)
    assert jnp.allclose(out, ref, rtol=1e-1, atol=1e-1)

    # ---- out_features == 3 path (regression + classification heads) --------
    prep3 = prepare_params(raw, channels, kernel_size, window_size, out_features=3)
    out_r, out_c = cnn_forward(prep3, x, 3)
    jax.block_until_ready((out_r, out_c))
    assert out_r.shape == (B, 2) and out_c.shape == (B, 1)
    ref_r, ref_c = reference_forward(raw, x, 3)
    assert jnp.allclose(out_r, ref_r, rtol=1e-1, atol=1e-1)
    assert jnp.allclose(out_c, ref_c, rtol=1e-1, atol=1e-1)

    # ---- larger batch: multi-step 'parallel' grid + bf16 input -------------
    B2 = 64
    x2 = jax.random.normal(jax.random.PRNGKey(1),
                           (B2, channels, window_size), jnp.bfloat16)
    out2 = cnn_forward(prep4, x2, 4)   # auto batch_tile -> 2 grid steps
    jax.block_until_ready(out2)
    assert out2.shape == (B2, 4)

    print("KERNEL_OK")
</pallas_src>

<mosaic_0001>
module attributes {stable_mosaic.version = 11 : i64} {
  func.func @_cnn_kernel(%arg0: i32, %arg1: memref<2x64xf32, #tpu.memory_space<vmem>>, %arg2: memref<64x56xbf16, #tpu.memory_space<vmem>>, %arg3: memref<1x56xf32, #tpu.memory_space<vmem>>, %arg4: memref<56x48xbf16, #tpu.memory_space<vmem>>, %arg5: memref<1x48xf32, #tpu.memory_space<vmem>>, %arg6: memref<48x4xbf16, #tpu.memory_space<vmem>>, %arg7: memref<1x4xf32, #tpu.memory_space<vmem>>, %arg8: memref<2x4xf32, #tpu.memory_space<vmem>>) attributes {dimension_semantics = [#tpu.dimension_semantics<parallel>], iteration_bounds = array<i64: 1>, scalar_prefetch = 0 : i64, scratch_operands = 0 : i64, tpu.core_type = #tpu.core_type<tc>, window_params = [{transform_indices = @transform_0, window_bounds = array<i64: 2, 64>}, {pipeline_mode = #tpu.pipeline_mode<synchronous>, transform_indices = @transform_1, window_bounds = array<i64: 64, 56>}, {pipeline_mode = #tpu.pipeline_mode<synchronous>, transform_indices = @transform_2, window_bounds = array<i64: 1, 56>}, {pipeline_mode = #tpu.pipeline_mode<synchronous>, transform_indices = @transform_3, window_bounds = array<i64: 56, 48>}, {pipeline_mode = #tpu.pipeline_mode<synchronous>, transform_indices = @transform_4, window_bounds = array<i64: 1, 48>}, {pipeline_mode = #tpu.pipeline_mode<synchronous>, transform_indices = @transform_5, window_bounds = array<i64: 48, 4>}, {pipeline_mode = #tpu.pipeline_mode<synchronous>, transform_indices = @transform_6, window_bounds = array<i64: 1, 4>}, {transform_indices = @transform_7, window_bounds = array<i64: 2, 4>}]} {
    %c0 = arith.constant 0 : index
    %c0_0 = arith.constant 0 : index
    %0 = vector.load %arg1[%c0, %c0_0] : memref<2x64xf32, #tpu.memory_space<vmem>>, vector<2x64xf32>
    %1 = arith.truncf %0 : vector<2x64xf32> to vector<2x64xbf16>
    %c0_1 = arith.constant 0 : index
    %c0_2 = arith.constant 0 : index
    %2 = vector.load %arg2[%c0_1, %c0_2] : memref<64x56xbf16, #tpu.memory_space<vmem>>, vector<64x56xbf16>
    %cst = arith.constant dense<0.000000e+00> : vector<2x56xf32>
    %3 = tpu.matmul %1, %2, %cst {dimension_numbers = #tpu.dot_dimension_numbers<[1], [0], [0], [1], [0, 0, 1, 1], [], []>} : vector<2x64xbf16>, vector<64x56xbf16>, vector<2x56xf32> -> vector<2x56xf32>
    %c0_3 = arith.constant 0 : index
    %c0_4 = arith.constant 0 : index
    %4 = vector.load %arg3[%c0_3, %c0_4] : memref<1x56xf32, #tpu.memory_space<vmem>>, vector<1x56xf32>
    %5 = vector.broadcast %4 : vector<1x56xf32> to vector<2x56xf32>
    %6 = arith.addf %3, %5 : vector<2x56xf32>
    %cst_5 = arith.constant 0.000000e+00 : f32
    %7 = vector.broadcast %cst_5 : f32 to vector<2x56xf32>
    %8 = arith.maximumf %6, %7 : vector<2x56xf32>
    %9 = arith.truncf %8 : vector<2x56xf32> to vector<2x56xbf16>
    %c0_6 = arith.constant 0 : index
    %c0_7 = arith.constant 0 : index
    %10 = vector.load %arg4[%c0_6, %c0_7] : memref<56x48xbf16, #tpu.memory_space<vmem>>, vector<56x48xbf16>
    %cst_8 = arith.constant dense<0.000000e+00> : vector<2x48xf32>
    %11 = tpu.matmul %9, %10, %cst_8 {dimension_numbers = #tpu.dot_dimension_numbers<[1], [0], [0], [1], [0, 0, 1, 1], [], []>} : vector<2x56xbf16>, vector<56x48xbf16>, vector<2x48xf32> -> vector<2x48xf32>
    %c0_9 = arith.constant 0 : index
    %c0_10 = arith.constant 0 : index
    %12 = vector.load %arg5[%c0_9, %c0_10] : memref<1x48xf32, #tpu.memory_space<vmem>>, vector<1x48xf32>
    %13 = vector.broadcast %12 : vector<1x48xf32> to vector<2x48xf32>
    %14 = arith.addf %11, %13 : vector<2x48xf32>
    %cst_11 = arith.constant 0.000000e+00 : f32
    %15 = vector.broadcast %cst_11 : f32 to vector<2x48xf32>
    %16 = arith.maximumf %14, %15 : vector<2x48xf32>
    %17 = arith.truncf %16 : vector<2x48xf32> to vector<2x48xbf16>
    %c0_12 = arith.constant 0 : index
    %c0_13 = arith.constant 0 : index
    %18 = vector.load %arg6[%c0_12, %c0_13] : memref<48x4xbf16, #tpu.memory_space<vmem>>, vector<48x4xbf16>
    %cst_14 = arith.constant dense<0.000000e+00> : vector<2x4xf32>
    %19 = tpu.matmul %17, %18, %cst_14 {dimension_numbers = #tpu.dot_dimension_numbers<[1], [0], [0], [1], [0, 0, 1, 1], [], []>} : vector<2x48xbf16>, vector<48x4xbf16>, vector<2x4xf32> -> vector<2x4xf32>
    %c0_15 = arith.constant 0 : index
    %c0_16 = arith.constant 0 : index
    %20 = vector.load %arg7[%c0_15, %c0_16] : memref<1x4xf32, #tpu.memory_space<vmem>>, vector<1x4xf32>
    %21 = vector.broadcast %20 : vector<1x4xf32> to vector<2x4xf32>
    %22 = arith.addf %19, %21 : vector<2x4xf32>
    %c0_17 = arith.constant 0 : index
    %c0_18 = arith.constant 0 : index
    %23 = vector.load %arg8[%c0_17, %c0_18] : memref<2x4xf32, #tpu.memory_space<vmem>>, vector<2x4xf32>
    tpu.vector_store %arg8[%c0_17, %c0_18], %22 {strides = array<i32>} : memref<2x4xf32, #tpu.memory_space<vmem>>, vector<2x4xf32>,
    return
  }
  func.func @transform_0(%arg0: i32) -> (i32, i32) {
    %c0_i32 = arith.constant 0 : i32
    %c0_i32_0 = arith.constant 0 : i32
    return %arg0, %c0_i32 : i32, i32
  }
  func.func @transform_1(%arg0: i32) -> (i32, i32) {
    %c0_i32 = arith.constant 0 : i32
    %c0_i32_0 = arith.constant 0 : i32
    %c0_i32_1 = arith.constant 0 : i32
    return %c0_i32, %c0_i32_0 : i32, i32
  }
  func.func @transform_2(%arg0: i32) -> (i32, i32) {
    %c0_i32 = arith.constant 0 : i32
    %c0_i32_0 = arith.constant 0 : i32
    %c0_i32_1 = arith.constant 0 : i32
    return %c0_i32, %c0_i32_0 : i32, i32
  }
  func.func @transform_3(%arg0: i32) -> (i32, i32) {
    %c0_i32 = arith.constant 0 : i32
    %c0_i32_0 = arith.constant 0 : i32
    %c0_i32_1 = arith.constant 0 : i32
    return %c0_i32, %c0_i32_0 : i32, i32
  }
  func.func @transform_4(%arg0: i32) -> (i32, i32) {
    %c0_i32 = arith.constant 0 : i32
    %c0_i32_0 = arith.constant 0 : i32
    %c0_i32_1 = arith.constant 0 : i32
    return %c0_i32, %c0_i32_0 : i32, i32
  }
  func.func @transform_5(%arg0: i32) -> (i32, i32) {
    %c0_i32 = arith.constant 0 : i32
    %c0_i32_0 = arith.constant 0 : i32
    %c0_i32_1 = arith.constant 0 : i32
    return %c0_i32, %c0_i32_0 : i32, i32
  }
  func.func @transform_6(%arg0: i32) -> (i32, i32) {
    %c0_i32 = arith.constant 0 : i32
    %c0_i32_0 = arith.constant 0 : i32
    %c0_i32_1 = arith.constant 0 : i32
    return %c0_i32, %c0_i32_0 : i32, i32
  }
  func.func @transform_7(%arg0: i32) -> (i32, i32) {
    %c0_i32 = arith.constant 0 : i32
    %c0_i32_0 = arith.constant 0 : i32
    return %arg0, %c0_i32 : i32, i32
  }
}

</mosaic_0001>

<bundles_post_ra>
// kernel: tpu_custom_call.1
= control target key start
LH: loop header
LB: loop body
LE: loop exit
PB: predicated region body
PF: predicated region fallthrough
CT: control target
= control target key end

     0   :  { %vm121_vm0 = vcmask 1043456   ;;  %s375_s0 = inlined_call_operand.vmem [shape: f32[2,64], index: 0, kind: input, shape index: {}]   ;;  %s376_s1 = inlined_call_operand.vmem [shape: bf16[64,56], index: 1, kind: input, shape index: {}]   ;;  %s377_s2 = inlined_call_operand.vmem [shape: f32[1,56], index: 2, kind: input, shape index: {}]   ;;  %s378_s3 = inlined_call_operand.vmem [shape: bf16[56,48], index: 3, kind: input, shape index: {}]   ;;  %s379_s4 = inlined_call_operand.vmem [shape: f32[1,48], index: 4, kind: input, shape index: {}]   ;;  %s380_s5 = inlined_call_operand.vmem [shape: bf16[48,4], index: 5, kind: input, shape index: {}]   ;;  %s381_s6 = inlined_call_operand.vmem [shape: f32[1,4], index: 6, kind: input, shape index: {}]   ;;  %s382_s7 = inlined_call_operand.hbm [shape: f32[2,4], index: 7, kind: output, shape index: {}]  }
   0x1   :  { %v249_v0 = vld [vmem:[%s376_s1 + $0x18] sm:$0xff]  ;;  %v248_v2 = vld [vmem:[%s376_s1 + $0x10] sm:$0xff] }
   0x2   :  { %v91_v1 = vld [vmem:[%s378_s3 + $0x18] sm:$0xf]  ;;  %74 = vmatpush.bf16.msra.mxu0 %v249_v0 }
   0x3   :  { %v109_v3 = vunpack.c.l.b16 %v91_v1 }
   0x4   :  { %12 = vsyncpa [#allocation3], 0  ;;  %v247_v5 = vld [vmem:[%s376_s1 + $0x8] sm:$0xff]  ;;  %v252_v7 = vld [vmem:[%s378_s3 + $0x10] sm:$0xff]  ;;  %vm66_vm1 = vcmask 523264   ;;  %vm117_vm2 = vcmask 457728  }
   0x5   :  { %v113_v4 = vpack.c.b16 %v109_v3, %v109_v3  ;;  %v246_v8 = vld [vmem:[%s376_s1] sm:$0xff]  ;;  %v251_v11 = vld [vmem:[%s378_s3 + $0x8] sm:$0xff]  ;;  %v255_v13 = vld [vmem:[%s380_s5 + $0x10] sm:$0xff]  ;;  %vm168_vm3 = vcmask 392192   ;;  %s286_s27 = smov [#allocation2]   ;;  %s194_s30 = sshll.u32 %s382_s7, 4  ;;  %s195_s30 = int_to_ptr.hbm [resolvable:$true] %s194_s30 }
   0x6   :  { %75 = vmatpush.bf16.msra.mxu0 %v248_v2  ;;  %v28_v9 = vld [vmem:[%s375_s0] sm:$0x3]  ;;  %177 = vmatpush.bf16.msra.mxu2 %v255_v13  ;;  %v254_v20 = vld [vmem:[%s380_s5 + $0x8] sm:$0xff]  ;;  %s192_s28 = sshll.u32 %s286_s27, 4  ;;  %vm185_vm4 = vcmask 25600   ;;  %s193_s28 = int_to_ptr.vmem [resolvable:$true] %s192_s28 }
   0x7   :  { %v123_v6 = vsel %vm121_vm0, %v113_v4, 0  ;;  %v29_v10 = vpack.c.bf16 %v28_v9, %v28_v9  ;;  %v250_v12 = vld [vmem:[%s378_s3] sm:$0xff] }
   0x8   :  { %129 = vmatpush.bf16.msra.mxu1 %v123_v6  ;;  %v257_v14 = vld [vmem:[%s377_s2] ss:$0 sm:$0xff] }
   0x9   :  { %v253_v21 = vld [vmem:[%s380_s5] sm:$0xff] }
   0xa   :  { %76 = vmatpush.bf16.msra.mxu0 %v247_v5  ;;  %178 = vmatpush.bf16.msra.mxu2 %v254_v20  ;;  %v258_v22 = vld [vmem:[%s379_s4] ss:$0 sm:$0xff] }
   0xb   :  { %v259_v28 = vld [vmem:[%s381_s6] ss:$0 sm:$0xff] }
   0xc   :  { %130 = vmatpush.bf16.msra.mxu1 %v252_v7 }
   0xe   :  { %77 = vmatpush.bf16.msra.mxu0 %v246_v8  ;;  %179 = vmatpush.bf16.msra.mxu2 %v253_v21 }
  0x10   :  { %131 = vmatpush.bf16.msra.mxu1 %v251_v11 }
  0x11   :  { %219 = vmatmul.msk.bf16.vlgmr.msra.gmra.mxu0 %vm66_vm1, %v29_v10 }
  0x14   :  { %132 = vmatpush.bf16.msra.mxu1 %v250_v12 }
  0x8e   :  { %v79_v15 = vpop.f32.mrf.mxu0 }
  0x8f   :  { %v80_v16 = vadd.f32 %v257_v14, %v79_v15 }
  0x91   :  { %v83_v17 = vmax.f32 %v80_v16, 0.0 }
  0x93   :  { %v84_v18 = vpack.c.bf16 %v83_v17, %v83_v17 }
  0x95   :  { %232 = vmatmul.msk.bf16.vlgmr.msra.gmra.mxu1 %vm117_vm2, %v84_v18 }
  0x96   :  { %v81_v19 = vpop.f32.mrf.mxu0 }
 0x112   :  { %v134_v23 = vpop.f32.mrf.mxu1 }
 0x113   :  { %v135_v24 = vadd.f32 %v258_v22, %v134_v23 }
 0x115   :  { %v138_v25 = vmax.f32 %v135_v24, 0.0 }
 0x117   :  { %v139_v26 = vpack.c.bf16 %v138_v25, %v138_v25 }
 0x119   :  { %245 = vmatmul.msk.bf16.vlgmr.msra.gmra.mxu2 %vm168_vm3, %v139_v26 }
 0x11a   :  { %v136_v27 = vpop.f32.mrf.mxu1 }
 0x19c   :  { %v181_v29 = vpop.f32.mrf.mxu2 }
 0x19d   :  { %v182_v30 = vadd.f32 %v259_v28, %v181_v29 }
 0x19f   :  { %186 = vst.msk [vmem:[#allocation2] sm:$0x3] %vm185_vm4, %v182_v30 }
 0x1a0   :  { %197 = dma.vmem_to_hbm [thread:$0]  %s193_s28, 32, %s195_s30, [#allocation3]  }
 0x1a4   :  { %v183_v31 = vpop.f32.mrf.mxu2 }
 0x1a5   :  { %284 = dma.done.wait [#allocation3], 32  }
 0x1a6   :  { %285 = vsyncadd [#allocation3], 4294967264 }
 0x1a7   :  { %202 = vsyncpa [#allocation3], 1 }

</bundles_post_ra>
